<compile_context>
chip_gen: v6e
topology: v6e:2x2x1
jax: 0.10.0
libtpu: 0.0.40
codegen_flags: <defaults>
</compile_context>

<pallas_src>
import jax
import jax.numpy as jnp
from jax.experimental import pallas as pl
from jax.experimental.pallas import tpu as pltpu

# ----------------------------- config ---------------------------------------
BATCH = 2
INPUT_SIZE = 4
READ_SIZE = 8
HIDDEN_SIZE = 32
STATE_SIZE = 64          # linear_layers[0]
N_ARGS = 4

IR_SIZE = INPUT_SIZE + READ_SIZE            # 12
QIR_SIZE = HIDDEN_SIZE + IR_SIZE            # 44
FUSED1_OUT = STATE_SIZE + 6 * HIDDEN_SIZE   # 64 + 192 = 256 (one MXU tile v6e/v7x)
HEAD_OUT = N_ARGS + 2 * READ_SIZE           # 20
SLAB_W = 128                                # lane-dense output width


# ----------------------------- kernel ---------------------------------------
def gru_controller_kernel(qir1_ref, w1_ref, w2_ref, b2_ref, out_ref):
    H = HIDDEN_SIZE
    S = STATE_SIZE

    qir1 = qir1_ref[...]                                    # (B, QIR+1)

    # --- MXU pass 1: state / gi / gh in one shot (biases folded) -------------
    fused = jnp.dot(qir1, w1_ref[...],
                    preferred_element_type=jnp.float32)     # (B, 256)

    state = fused[:, 0:S]
    state = jnp.where(state > 0, state, 0.01 * state)       # LeakyReLU(0.01)

    gi = fused[:, S:S + 3 * H]                               # ir @ W_ih + b_ih
    gh = fused[:, S + 3 * H:S + 6 * H]                       # h  @ W_hh + b_hh

    # --- MXU pass 2: nargs / v1 / v2 off state --------------------------------
    head = jnp.dot(state, w2_ref[...],
                   preferred_element_type=jnp.float32) + b2_ref[...]   # (B, 20)
    nargs = jax.nn.sigmoid(head[:, 0:N_ARGS])
    v1 = jnp.tanh(head[:, N_ARGS:N_ARGS + READ_SIZE])
    v2 = jnp.tanh(head[:, N_ARGS + READ_SIZE:N_ARGS + 2 * READ_SIZE])

    # --- GRUCell update (PyTorch gate order [r, z, n]) ------------------------
    i_r, i_z, i_n = gi[:, 0:H], gi[:, H:2 * H], gi[:, 2 * H:3 * H]
    h_r, h_z, h_n = gh[:, 0:H], gh[:, H:2 * H], gh[:, 2 * H:3 * H]

    r_gate = jax.nn.sigmoid(i_r + h_r)
    z_gate = jax.nn.sigmoid(i_z + h_z)
    n_gate = jnp.tanh(i_n + r_gate * h_n)

    h_prev = qir1[:, 0:H]                                    # hidden lives in qir[:, :H]
    h_new = (1.0 - z_gate) * n_gate + z_gate * h_prev

    # --- single unmasked lane-dense store -------------------------------------
    pad_w = SLAB_W - (H + 2 * READ_SIZE + N_ARGS)
    pad = jnp.zeros((h_new.shape[0], pad_w), jnp.float32)
    out_ref[...] = jnp.concatenate([h_new, v1, v2, nargs, pad], axis=1)


# ----------------------------- wrapper ---------------------------------------
def gru_controller_forward(x, r, hidden, packed):
    """Returns (new_hidden, v1, v2, nargs). nargs split is deferred to the consumer."""
    w1, w2, b2 = packed
    B = x.shape[0]

    ones = jnp.ones((B, 1), jnp.float32)
    qir1 = jnp.concatenate([hidden, x, r, ones], axis=1)     # (B, QIR+1)

    vmem = pl.BlockSpec(memory_space=pltpu.MemorySpace.VMEM)
    slab = pl.pallas_call(
        gru_controller_kernel,
        out_shape=jax.ShapeDtypeStruct((B, SLAB_W), jnp.float32),
        in_specs=[vmem, vmem, vmem, vmem],
        out_specs=vmem,
    )(qir1, w1, w2, b2)

    h_new = slab[:, 0:HIDDEN_SIZE]
    v1 = slab[:, HIDDEN_SIZE:HIDDEN_SIZE + READ_SIZE]
    v2 = slab[:, HIDDEN_SIZE + READ_SIZE:HIDDEN_SIZE + 2 * READ_SIZE]
    nargs = slab[:, HIDDEN_SIZE + 2 * READ_SIZE:HIDDEN_SIZE + 2 * READ_SIZE + N_ARGS]
    return h_new, v1, v2, nargs


def split_instructions(nargs):
    """torch.split(nargs, [1]*n_args, dim=1) — call only where the columns are consumed."""
    return tuple(nargs[:, i:i + 1] for i in range(N_ARGS))


# ----------------------------- weight packing --------------------------------
def pack_params(p):
    """Fold the 6 Linear/GRUCell weight+bias pairs into two fused matrices.

    Input weights are stored pre-transposed as (in_features, out_features),
    GRUCell gate order [r, z, n] along the output axis (PyTorch semantics).
    """
    H, Q, S = HIDDEN_SIZE, QIR_SIZE, STATE_SIZE

    # W1: (QIR+1, 256) acting on [hidden | ir | 1]
    w1 = jnp.zeros((Q + 1, FUSED1_OUT), jnp.float32)
    w1 = w1.at[0:Q, 0:S].set(p["w_state"])                     # state <- full qir
    w1 = w1.at[Q, 0:S].set(p["b_state"][0])
    w1 = w1.at[H:Q, S:S + 3 * H].set(p["w_ih"])                # gi <- ir rows only
    w1 = w1.at[Q, S:S + 3 * H].set(p["b_ih"][0])
    w1 = w1.at[0:H, S + 3 * H:S + 6 * H].set(p["w_hh"])        # gh <- hidden rows only
    w1 = w1.at[Q, S + 3 * H:S + 6 * H].set(p["b_hh"][0])

    # W2: (64, 20) = [nargs | v1 | v2], bias kept as one (1, 20) add
    w2 = jnp.concatenate([p["w_nargs"], p["w_v1"], p["w_v2"]], axis=1)
    b2 = jnp.concatenate([p["b_nargs"], p["b_v1"], p["b_v2"]], axis=1)
    return w1, w2, b2


# ----------------------------- reference (pure JAX) --------------------------
def reference_forward(x, r, hidden, p):
    ir = jnp.concatenate([x, r], axis=1)
    qir = jnp.concatenate([hidden, ir], axis=1)
    state = qir @ p["w_state"] + p["b_state"]
    state = jnp.where(state > 0, state, 0.01 * state)
    nargs = jax.nn.sigmoid(state @ p["w_nargs"] + p["b_nargs"])
    v1 = jnp.tanh(state @ p["w_v1"] + p["b_v1"])
    v2 = jnp.tanh(state @ p["w_v2"] + p["b_v2"])
    gi = ir @ p["w_ih"] + p["b_ih"]
    gh = hidden @ p["w_hh"] + p["b_hh"]
    H = HIDDEN_SIZE
    r_g = jax.nn.sigmoid(gi[:, :H] + gh[:, :H])
    z_g = jax.nn.sigmoid(gi[:, H:2 * H] + gh[:, H:2 * H])
    n_g = jnp.tanh(gi[:, 2 * H:] + r_g * gh[:, 2 * H:])
    h_new = (1.0 - z_g) * n_g + z_g * hidden
    return h_new, v1, v2, nargs


# ----------------------------- main ------------------------------------------
def make_params(key):
    """Deterministic synthetic parameters (shapes from the module __init__)."""
    ks = jax.random.split(key, 16)

    def lin(kw, kb, fan_in, fan_out):
        w = jax.random.normal(kw, (fan_in, fan_out), jnp.float32) * (1.0 / jnp.sqrt(fan_in))
        b = jax.random.normal(kb, (1, fan_out), jnp.float32) * 0.01
        return w, b

    p = {}
    p["w_state"], p["b_state"] = lin(ks[0], ks[1], QIR_SIZE, STATE_SIZE)
    p["w_nargs"], p["b_nargs"] = lin(ks[2], ks[3], STATE_SIZE, N_ARGS)
    p["w_v1"], p["b_v1"] = lin(ks[4], ks[5], STATE_SIZE, READ_SIZE)
    p["w_v2"], p["b_v2"] = lin(ks[6], ks[7], STATE_SIZE, READ_SIZE)
    p["w_ih"], p["b_ih"] = lin(ks[8], ks[9], IR_SIZE, 3 * HIDDEN_SIZE)
    p["w_hh"], p["b_hh"] = lin(ks[10], ks[11], HIDDEN_SIZE, 3 * HIDDEN_SIZE)
    return p


if __name__ == "__main__":
    key = jax.random.PRNGKey(0)
    k_x, k_r, k_p = jax.random.split(key, 3)

    x = jax.random.normal(k_x, (BATCH, INPUT_SIZE), jnp.float32)
    r = jax.random.normal(k_r, (BATCH, READ_SIZE), jnp.float32)
    hidden = jnp.zeros((BATCH, HIDDEN_SIZE), jnp.float32)   # self.init()
    params = make_params(k_p)
    packed = pack_params(params)

    forward = jax.jit(gru_controller_forward)
    h_new, v1, v2, nargs = forward(x, r, hidden, packed)
    jax.block_until_ready((h_new, v1, v2, nargs))

    # correctness check against pure-JAX reference (unfused weights)
    h_ref, v1_ref, v2_ref, nargs_ref = reference_forward(x, r, hidden, params)
    assert jnp.allclose(h_new, h_ref, atol=1e-4)
    assert jnp.allclose(v1, v1_ref, atol=1e-4)
    assert jnp.allclose(v2, v2_ref, atol=1e-4)
    assert jnp.allclose(nargs, nargs_ref, atol=1e-4)

    # module-semantics check: instructions split (done only where consumed)
    instructions = split_instructions(nargs)
    assert len(instructions) == N_ARGS and instructions[0].shape == (BATCH, 1)

    print("KERNEL_OK")
</pallas_src>

<mosaic_0001>
module attributes {stable_mosaic.version = 11 : i64} {
  func.func @gru_controller_kernel(%arg0: memref<2x45xf32, #tpu.memory_space<vmem>>, %arg1: memref<45x256xf32, #tpu.memory_space<vmem>>, %arg2: memref<64x20xf32, #tpu.memory_space<vmem>>, %arg3: memref<1x20xf32, #tpu.memory_space<vmem>>, %arg4: memref<2x128xf32, #tpu.memory_space<vmem>>) attributes {dimension_semantics = [], scalar_prefetch = 0 : i64, scratch_operands = 0 : i64, tpu.core_type = #tpu.core_type<tc>} {
    %c0 = arith.constant 0 : index
    %c0_0 = arith.constant 0 : index
    %0 = vector.load %arg0[%c0, %c0_0] : memref<2x45xf32, #tpu.memory_space<vmem>>, vector<2x45xf32>
    %c0_1 = arith.constant 0 : index
    %c0_2 = arith.constant 0 : index
    %1 = vector.load %arg1[%c0_1, %c0_2] : memref<45x256xf32, #tpu.memory_space<vmem>>, vector<45x256xf32>
    %cst = arith.constant dense<0.000000e+00> : vector<2x256xf32>
    %2 = tpu.matmul %0, %1, %cst {dimension_numbers = #tpu.dot_dimension_numbers<[1], [0], [0], [1], [0, 0, 1, 1], [], []>} : vector<2x45xf32>, vector<45x256xf32>, vector<2x256xf32> -> vector<2x256xf32>
    %3 = vector.extract_strided_slice %2 {offsets = [0, 0], sizes = [2, 64], strides = [1, 1]} : vector<2x256xf32> to vector<2x64xf32>
    %cst_3 = arith.constant 0.000000e+00 : f32
    %4 = vector.broadcast %cst_3 : f32 to vector<2x64xf32>
    %5 = arith.cmpf ogt, %3, %4 : vector<2x64xf32>
    %cst_4 = arith.constant 0.00999999977 : f32
    %6 = vector.broadcast %cst_4 : f32 to vector<2x64xf32>
    %7 = arith.mulf %6, %3 : vector<2x64xf32>
    %8 = arith.select %5, %3, %7 : vector<2x64xi1>, vector<2x64xf32>
    %9 = vector.extract_strided_slice %2 {offsets = [0, 64], sizes = [2, 96], strides = [1, 1]} : vector<2x256xf32> to vector<2x96xf32>
    %10 = vector.extract_strided_slice %2 {offsets = [0, 160], sizes = [2, 96], strides = [1, 1]} : vector<2x256xf32> to vector<2x96xf32>
    %c0_5 = arith.constant 0 : index
    %c0_6 = arith.constant 0 : index
    %11 = vector.load %arg2[%c0_5, %c0_6] : memref<64x20xf32, #tpu.memory_space<vmem>>, vector<64x20xf32>
    %cst_7 = arith.constant dense<0.000000e+00> : vector<2x20xf32>
    %12 = tpu.matmul %8, %11, %cst_7 {dimension_numbers = #tpu.dot_dimension_numbers<[1], [0], [0], [1], [0, 0, 1, 1], [], []>} : vector<2x64xf32>, vector<64x20xf32>, vector<2x20xf32> -> vector<2x20xf32>
    %c0_8 = arith.constant 0 : index
    %c0_9 = arith.constant 0 : index
    %13 = vector.load %arg3[%c0_8, %c0_9] : memref<1x20xf32, #tpu.memory_space<vmem>>, vector<1x20xf32>
    %14 = vector.broadcast %13 : vector<1x20xf32> to vector<2x20xf32>
    %15 = arith.addf %12, %14 : vector<2x20xf32>
    %16 = vector.extract_strided_slice %15 {offsets = [0, 0], sizes = [2, 4], strides = [1, 1]} : vector<2x20xf32> to vector<2x4xf32>
    %17 = arith.negf %16 : vector<2x4xf32>
    %18 = math.exp %17 : vector<2x4xf32>
    %cst_10 = arith.constant 1.000000e+00 : f32
    %19 = vector.broadcast %cst_10 : f32 to vector<2x4xf32>
    %20 = arith.addf %19, %18 : vector<2x4xf32>
    %21 = arith.divf %19, %20 : vector<2x4xf32>
    %22 = vector.extract_strided_slice %15 {offsets = [0, 4], sizes = [2, 8], strides = [1, 1]} : vector<2x20xf32> to vector<2x8xf32>
    %23 = math.tanh %22 : vector<2x8xf32>
    %24 = vector.extract_strided_slice %15 {offsets = [0, 12], sizes = [2, 8], strides = [1, 1]} : vector<2x20xf32> to vector<2x8xf32>
    %25 = math.tanh %24 : vector<2x8xf32>
    %26 = vector.extract_strided_slice %9 {offsets = [0, 0], sizes = [2, 32], strides = [1, 1]} : vector<2x96xf32> to vector<2x32xf32>
    %27 = vector.extract_strided_slice %9 {offsets = [0, 32], sizes = [2, 32], strides = [1, 1]} : vector<2x96xf32> to vector<2x32xf32>
    %28 = vector.extract_strided_slice %9 {offsets = [0, 64], sizes = [2, 32], strides = [1, 1]} : vector<2x96xf32> to vector<2x32xf32>
    %29 = vector.extract_strided_slice %10 {offsets = [0, 0], sizes = [2, 32], strides = [1, 1]} : vector<2x96xf32> to vector<2x32xf32>
    %30 = vector.extract_strided_slice %10 {offsets = [0, 32], sizes = [2, 32], strides = [1, 1]} : vector<2x96xf32> to vector<2x32xf32>
    %31 = vector.extract_strided_slice %10 {offsets = [0, 64], sizes = [2, 32], strides = [1, 1]} : vector<2x96xf32> to vector<2x32xf32>
    %32 = arith.addf %26, %29 : vector<2x32xf32>
    %33 = arith.negf %32 : vector<2x32xf32>
    %34 = math.exp %33 : vector<2x32xf32>
    %cst_11 = arith.constant 1.000000e+00 : f32
    %35 = vector.broadcast %cst_11 : f32 to vector<2x32xf32>
    %36 = arith.addf %35, %34 : vector<2x32xf32>
    %37 = arith.divf %35, %36 : vector<2x32xf32>
    %38 = arith.addf %27, %30 : vector<2x32xf32>
    %39 = arith.negf %38 : vector<2x32xf32>
    %40 = math.exp %39 : vector<2x32xf32>
    %cst_12 = arith.constant 1.000000e+00 : f32
    %41 = vector.broadcast %cst_12 : f32 to vector<2x32xf32>
    %42 = arith.addf %41, %40 : vector<2x32xf32>
    %43 = arith.divf %41, %42 : vector<2x32xf32>
    %44 = arith.mulf %37, %31 : vector<2x32xf32>
    %45 = arith.addf %28, %44 : vector<2x32xf32>
    %46 = math.tanh %45 : vector<2x32xf32>
    %47 = vector.extract_strided_slice %0 {offsets = [0, 0], sizes = [2, 32], strides = [1, 1]} : vector<2x45xf32> to vector<2x32xf32>
    %cst_13 = arith.constant 1.000000e+00 : f32
    %48 = vector.broadcast %cst_13 : f32 to vector<2x32xf32>
    %49 = arith.subf %48, %43 : vector<2x32xf32>
    %50 = arith.mulf %49, %46 : vector<2x32xf32>
    %51 = arith.mulf %43, %47 : vector<2x32xf32>
    %52 = arith.addf %50, %51 : vector<2x32xf32>
    %cst_14 = arith.constant 0.000000e+00 : f32
    %53 = vector.broadcast %cst_14 : f32 to vector<2x76xf32>
    %54 = tpu.concatenate %52, %23, %25, %21, %53 in 1 : vector<2x32xf32>, vector<2x8xf32>, vector<2x8xf32>, vector<2x4xf32>, vector<2x76xf32> -> vector<2x128xf32>
    %c0_15 = arith.constant 0 : index
    %c0_16 = arith.constant 0 : index
    %55 = vector.load %arg4[%c0_15, %c0_16] : memref<2x128xf32, #tpu.memory_space<vmem>>, vector<2x128xf32>
    tpu.vector_store %arg4[%c0_15, %c0_16], %54 {strides = array<i32>} : memref<2x128xf32, #tpu.memory_space<vmem>>, vector<2x128xf32>,
    return
  }
}

</mosaic_0001>

<bundles_post_ra>
// kernel: gru_controller_forward.1
= control target key start
LH: loop header
LB: loop body
LE: loop exit
PB: predicated region body
PF: predicated region fallthrough
CT: control target
= control target key end

     0   :  { %vm34_vm0 = vcmask 1044480   ;;  %v322_v3 = vmov 0.0   ;;  %vm30_vm1 = vcmask 367616   ;;  %vm323_vm2 = vmmov 0   ;;  %s324_s29 = smov 32   ;;  %s325_s30 = smov 96   ;;  %s425_s1 = inlined_call_operand.vmem [shape: f32[45,256], index: 1, kind: input, shape index: {}]   ;;  %s426_s2 = inlined_call_operand.vmem [shape: f32[64,20], index: 2, kind: input, shape index: {}]   ;;  %s427_s0 = inlined_call_operand.vmem [shape: f32[2,45], index: 0, kind: input, shape index: {}]   ;;  %s428_s3 = inlined_call_operand.vmem [shape: f32[1,20], index: 3, kind: input, shape index: {}]   ;;  %s429_s4 = inlined_call_operand.vmem [shape: f32[2,128], index: 4, kind: output, shape index: {}]  }
   0x1   :  { %v29_v0 = vld [vmem:[%s425_s1 + $0x58] sm:$0x1f]  ;;  %v28_v1 = vld [vmem:[%s425_s1 + $0x50] sm:$0x1f]  ;;  %v27_v2 = vld [vmem:[%s425_s1 + $0x48] sm:$0xff]  ;;  %105 = vmatprep.mubr.f32.mxu0 %v322_v3  ;;  %284 = vmatprep.subr.mxu1 %v322_v3  ;;  %vm130_vm4 = vcmask 523264  }
   0x2   :  { %268 = vmatprep.subr.msk.mxu0 %vm34_vm0, %v29_v0  ;;  %v26_v4 = vld [vmem:[%s425_s1 + $0x40] sm:$0xff]  ;;  %v25_v5 = vld [vmem:[%s425_s1 + $0x38] sm:$0xff]  ;;  %v24_v6 = vld [vmem:[%s425_s1 + $0x30] sm:$0xff]  ;;  %300 = vmatprep.mubr.msk.f32.mxu1 %vm323_vm2, %v322_v3  ;;  %s327_s7 = smov 28   ;;  %vm255_vm5 = vcmask 261120   ;;  %vm257_vm6 = vcmask 326656  }
   0x3   :  { %269 = vmatpush1.msk.msra.mxu0 %vm34_vm0, %v28_v1  ;;  %v23_v7 = vld [vmem:[%s425_s1 + $0x28] sm:$0xff]  ;;  %v122_v8 = vld [vmem:[%s426_s2 + $0x38] sm:$0xff]  ;;  %v121_v9 = vld [vmem:[%s426_s2 + $0x30] sm:$0xff]  ;;  %vm259_vm7 = vcmask 392192   ;;  %vm261_vm8 = vcmask 424960  }
   0x4   :  { %63 = vmatprep.subr.mxu0 %v27_v2  ;;  %v22_v10 = vld [vmem:[%s425_s1 + $0x20] sm:$0xff]  ;;  %285 = vmatpush3.msra.mxu1 %v122_v8  ;;  %v21_v11 = vld [vmem:[%s425_s1 + $0x18] sm:$0xff]  ;;  %v120_v12 = vld [vmem:[%s426_s2 + $0x28] sm:$0xff] }
   0x5   :  { %64 = vmatpush1.msra.mxu0 %v26_v4  ;;  %286 = vmatprep.subr.mxu1 %v322_v3  ;;  %v20_v13 = vld [vmem:[%s425_s1 + $0x10] sm:$0xff]  ;;  %v19_v14 = vld [vmem:[%s425_s1 + $0x8] sm:$0xff]  ;;  %v119_v15 = vld [vmem:[%s426_s2 + $0x20] sm:$0xff] }
   0x6   :  { %65 = vmatprep.subr.mxu0 %v25_v5  ;;  %287 = vmatpush3.msra.mxu1 %v121_v9  ;;  %v18_v16 = vld [vmem:[%s425_s1] sm:$0xff]  ;;  %v118_v18 = vld [vmem:[%s426_s2 + $0x18] sm:$0xff]  ;;  %v117_v19 = vld [vmem:[%s426_s2 + $0x10] sm:$0xff] }
   0x7   :  { %66 = vmatpush1.msra.mxu0 %v24_v6  ;;  %288 = vmatprep.subr.mxu1 %v322_v3  ;;  %v17_v17 = vld [vmem:[%s427_s0] sm:$0x3]  ;;  %v116_v20 = vld [vmem:[%s426_s2 + $0x8] sm:$0xff] }
   0x8   :  { %67 = vmatprep.subr.mxu0 %v23_v7  ;;  %289 = vmatpush3.msra.mxu1 %v120_v12  ;;  %v115_v21 = vld [vmem:[%s426_s2] sm:$0xff]  ;;  %s326_s2 = smov 64  }
   0x9   :  { %68 = vmatpush1.msra.mxu0 %v22_v10  ;;  %290 = vmatprep.subr.mxu1 %v322_v3  ;;  %v271_v34 = vld [vmem:[%s428_s3] ss:$0 sm:$0xff]  ;;  %s328_s3 = smov 48  }
   0xa   :  { %69 = vmatprep.subr.mxu0 %v21_v11  ;;  %291 = vmatpush3.msra.mxu1 %v119_v15 }
   0xb   :  { %70 = vmatpush1.msra.mxu0 %v20_v13  ;;  %292 = vmatprep.subr.mxu1 %v322_v3 }
   0xc   :  { %71 = vmatprep.subr.mxu0 %v19_v14  ;;  %293 = vmatpush3.msra.mxu1 %v118_v18 }
   0xd   :  { %72 = vmatpush1.msra.mxu0 %v18_v16  ;;  %294 = vmatprep.subr.mxu1 %v322_v3 }
   0xe   :  { %270 = vmatmul.mubr.msk.f32.vlgmr.msra.gmra.mxu0 %vm30_vm1, %v17_v17  ;;  %295 = vmatpush3.msra.mxu1 %v117_v19 }
   0xf   :  { %296 = vmatprep.subr.mxu1 %v322_v3 }
  0x10   :  { %297 = vmatpush3.msra.mxu1 %v116_v20 }
  0x11   :  { %298 = vmatprep.subr.mxu1 %v322_v3 }
  0x12   :  { %299 = vmatpush3.msra.mxu1 %v115_v21 }
  0xce   :  { %v107_v22 = vpop.f32.mrf.mxu0 }
  0xcf   :  { %v113_v23 = vmul.f32 0.01, %v107_v22  ;;  %vm112_vm3 = vcmp.gt.f32.partialorder %v107_v22, 0.0 }
  0xd0   :  { %v109_v24 = vpop.f32.mrf.mxu0 }
  0xd1   :  { %212 = vrot.lane.b32.xlu0 %v109_v24, %s324_s29  ;;  %v114_v25 = vsel %vm112_vm3, %v107_v22, %v113_v23 }
  0xd2   :  { %301 = vmatmul.mubr.msk.f32.vlgmr.msra.gmra.mxu1 %vm130_vm4, %v114_v25 }
  0xd5   :  { %222 = vrot.lane.b32.xlu0 %v109_v24, %s325_s30 }
  0xd9   :  { %238 = vrot.lane.b32.xlu0 %v17_v17, %s325_s30 }
 0x143   :  { %v213_v26 = vpop.permute.xlu0 %212 }
 0x144   :  { %v215_v27 = vadd.f32 %v213_v26, %v107_v22 }
 0x146   :  { %v274_v28 = vmul.f32 -1.442695, %v215_v27 }
 0x147   :  { %v223_v32 = vpop.permute.xlu0 %222 }
 0x148   :  { %310 = vpow2.f32 %v274_v28 }
 0x14b   :  { %v239_v45 = vpop.permute.xlu0 %238 }
 0x155   :  { %v311_v29 = vpop.eup %310 }
 0x156   :  { %v219_v30 = vadd.f32 1.0, %v311_v29 }
 0x158   :  { %312 = vrcp.f32 %v219_v30 }
 0x165   :  { %v313_v31 = vpop.eup %312 }
 0x166   :  { %v225_v33 = vmul.f32 %v313_v31, %v223_v32  ;;  %v232_v46 = vsub.f32 1.0, %v313_v31  ;;  %v241_v48 = vmul.f32 %v313_v31, %v239_v45 }
 0x168   :  { %227 = vrot.lane.b32.xlu1 %v225_v33, %s326_s2 }
 0x192   :  { %v200_v35 = vpop.f32.mrf.mxu1 }
 0x193   :  { %v201_v36 = vadd.f32 %v271_v34, %v200_v35 }
 0x194   :  { %v302_v37 = vpop.f32.mrf.mxu1 }
 0x195   :  { %314 = vtanh.f32 %v201_v36  ;;  %v273_v42 = vmul.f32 -1.442695, %v201_v36 }
 0x1a2   :  { %v315_v38 = vpop.eup %314 }
 0x1a3   :  { %248 = vrot.lane.b32.xlu0 %v315_v38, %s327_s7 }
 0x1da   :  { %v228_v39 = vpop.permute.xlu1 %227 }
 0x1db   :  { %v230_v40 = vadd.f32 %v228_v39, %v109_v24 }
 0x1dd   :  { %316 = vtanh.f32 %v230_v40 }
 0x1de   :  { %318 = vpow2.f32 %v273_v42 }
 0x1ea   :  { %v317_v41 = vpop.eup %316 }
 0x1eb   :  { %234 = vrot.lane.b32.xlu1 %v317_v41, %s325_s30  ;;  %v319_v43 = vpop.eup %318 }
 0x1ec   :  { %v207_v44 = vadd.f32 1.0, %v319_v43 }
 0x1ee   :  { %320 = vrcp.f32 %v207_v44 }
 0x1fb   :  { %v321_v51 = vpop.eup %320 }
 0x215   :  { %v249_v52 = vpop.permute.xlu0 %248 }
 0x25d   :  { %v235_v47 = vpop.permute.xlu1 %234 }
 0x25e   :  { %v237_v49 = vmul.f32 %v235_v47, %v232_v46 }
 0x260   :  { %v242_v50 = vadd.f32 %v241_v48, %v237_v49 }
 0x262   :  { %244 = vrot.lane.b32.xlu1 %v242_v50, %s324_s29 }
 0x266   :  { %252 = vrot.lane.b32.xlu1 %v321_v51, %s328_s3 }
 0x2d4   :  { %v245_v53 = vpop.permute.xlu1 %244 }
 0x2d5   :  { %v256_v54 = vsel %vm255_vm5, %v245_v53, %v249_v52 }
 0x2d6   :  { %v258_v56 = vsel %vm257_vm6, %v256_v54, %v249_v52 }
 0x2d8   :  { %v253_v55 = vpop.permute.xlu1 %252 }
 0x2d9   :  { %v260_v57 = vsel %vm259_vm7, %v258_v56, %v253_v55 }
 0x2da   :  { %v262_v58 = vsel %vm261_vm8, %v260_v57, 0.0 }
 0x2db   :  { %263 = vst [vmem:[%s429_s4] sm:$0x3] %v262_v58 }

</bundles_post_ra>
